<compile_context>
chip_gen: v7x
topology: tpu7x:2x2x1
jax: 0.10.0
libtpu: 0.0.40
codegen_flags: <defaults>
</compile_context>

<pallas_src>
import jax
import jax.numpy as jnp
from jax.experimental import pallas as pl
from jax.experimental.pallas import tpu as pltpu


def _pick_images_per_step(n, cin, cout, l, itemsize):
    """Largest divisor B of n whose per-step operand footprint is modest and which keeps
    the grid length >= 2 (so both v7x TensorCores stay busy) whenever n >= 2."""
    budget = 8 * 1024 * 1024  # per-step input + output + im2col bytes (pre double-buffer)
    best = 1
    for b in range(1, n + 1):
        if n % b:
            continue
        footprint = b * l * (cin + cout + 9 * cin) * itemsize
        if footprint > budget:
            continue
        if n >= 2 and n // b < 2:
            continue
        best = b
    return best


def conv3x3_relu(x_nchw, w_oihw, *, compute_dtype=jnp.float32, images_per_step=None):
    """3x3 conv (stride=1, padding=1, no bias) + ReLU.

    x_nchw: (N, Cin, H, W)    -- PyTorch-native NCHW activations.
    w_oihw: (Cout, Cin, 3, 3) -- PyTorch-native OIHW Conv2d weight.
    Returns (N, Cout, H, W) in NCHW, matching ConvRelu.forward.

    compute_dtype: matmul operand dtype. float32 keeps exact PyTorch fp32 semantics;
    bfloat16 hits the v6e/v7x MXU fast path (f32 accumulation, looser numerics).
    images_per_step: images packed along the lane axis per grid step (must divide N).
    """
    N, Cin, H, W = x_nchw.shape
    Cout = w_oihw.shape[0]
    assert w_oihw.shape == (Cout, Cin, 3, 3)
    L = H * W
    # Boundary masks use bit ops (lane & (L-1), q & (W-1)) instead of vector int div/mod,
    # and per-image masking along the concatenated lane axis needs L to be a power of two.
    assert W & (W - 1) == 0, "W must be a power of two"
    assert L & (L - 1) == 0, "H*W must be a power of two"
    K = 9 * Cin

    if images_per_step is None:
        images_per_step = _pick_images_per_step(N, Cin, Cout, L,
                                                jnp.dtype(compute_dtype).itemsize)
    B = images_per_step
    assert N % B == 0, "images_per_step must divide the batch size"
    BL = B * L

    # Free, contiguity-preserving reshape: each image becomes (Cin, H*W) with the spatial
    # axis on TPU lanes (dense vector loads, dense VMEM tiles, NCHW preserved).
    x_flat = x_nchw.reshape(N, Cin, L)
    # Weight as (Cout, K) with K ordered (kh, kw, ci) to match the im2col row order.
    w_mat = jnp.transpose(w_oihw, (0, 2, 3, 1)).reshape(Cout, K).astype(compute_dtype)

    def kernel(x_ref, w_ref, o_ref):
        # x_ref: (B, Cin, L), w_ref: (Cout, 9*Cin), o_ref: (B, Cout, L)

        # Concatenate the B images along the lane axis: (Cin, B*L). L is a multiple of
        # 128, so each image lands at an aligned lane offset (pure vreg placement).
        if B == 1:
            x = x_ref[0].astype(compute_dtype)
        else:
            x = jnp.concatenate([x_ref[b] for b in range(B)],
                                axis=1).astype(compute_dtype)

        # Per-image flat position q = h*W + w as a (1, B*L) lane function; broadcast over
        # the channel rows in jnp.where.  These masks replace the zero padding entirely
        # and also kill any roll leakage across image boundaries.
        lane = jax.lax.broadcasted_iota(jnp.int32, (1, BL), 1)
        q = jnp.bitwise_and(lane, L - 1)                 # position within its own image
        col = jnp.bitwise_and(q, W - 1)                  # w = q % W
        row_ok = {-1: q >= W, 0: None, 1: q < (H - 1) * W}   # 0 <= h+dh < H
        col_ok = {-1: col >= 1, 0: None, 1: col <= W - 2}    # 0 <= w+dw < W

        # Build the 9 shifted taps with lane rotations (XLU) + masks (VPU) and keep the
        # whole (9*Cin, B*L) im2col matrix in registers -- no VMEM scratch round trip.
        taps = []
        for dh in (-1, 0, 1):
            for dw in (-1, 0, 1):
                shift = (-(dh * W + dw)) % BL
                # tap[q] = x[q + dh*W + dw]; wrapped / cross-image entries are masked.
                tap = pltpu.roll(x, shift=shift, axis=1) if shift else x
                mask = row_ok[dh]
                if col_ok[dw] is not None:
                    mask = col_ok[dw] if mask is None else jnp.logical_and(mask, col_ok[dw])
                if mask is not None:
                    tap = jnp.where(mask, tap, jnp.zeros((), compute_dtype))
                taps.append(tap)
        patches = jnp.concatenate(taps, axis=0)          # (9*Cin, B*L) register value

        # Single im2col matmul on the MXU: (Cout, 9*Cin) @ (9*Cin, B*H*W), f32 accumulate.
        acc = jnp.dot(w_ref[...], patches, preferred_element_type=jnp.float32)
        y = jnp.maximum(acc, 0.0).astype(o_ref.dtype)    # (Cout, B*L), lane-dense

        # Per-image stores: each slice is a 128-multiple lane window -> unmasked dense vst.
        for b in range(B):
            o_ref[b] = y[:, b * L:(b + 1) * L]

    # TODO(synk): for large Cin/H/W, tile the grid over row blocks (halo handled by the same
    # masks) and raise vmem_limit_bytes per generation (v7x 64 MiB phys vs v5e/v6e 128 MiB).
    out_flat = pl.pallas_call(
        kernel,
        out_shape=jax.ShapeDtypeStruct((N, Cout, L), x_nchw.dtype),
        grid_spec=pltpu.PrefetchScalarGridSpec(
            num_scalar_prefetch=0,
            grid=(N // B,),                               # >=2 steps when N>=2 (v7x megacore)
            in_specs=[
                pl.BlockSpec((B, Cin, L), lambda g: (g, 0, 0)),
                pl.BlockSpec((Cout, K), lambda g: (0, 0)),
            ],
            out_specs=pl.BlockSpec((B, Cout, L), lambda g: (g, 0, 0)),
        ),
        compiler_params=pltpu.CompilerParams(
            dimension_semantics=("parallel",),
            vmem_limit_bytes=32 * 1024 * 1024,
        ),
    )(x_flat, w_mat)

    # Free reshape back to NCHW -- PyTorch's native output layout (no transpose needed).
    return out_flat.reshape(N, Cout, H, W)


if __name__ == "__main__":
    # ConvRelu(in_=4, out=8) on a (2, 4, 16, 16) NCHW input.
    N, Cin, H, W = 2, 4, 16, 16
    Cout = 8

    key = jax.random.PRNGKey(0)
    kx, kw = jax.random.split(key)
    x = jax.random.normal(kx, (N, Cin, H, W), dtype=jnp.float32)            # NCHW, like torch
    w = jax.random.normal(kw, (Cout, Cin, 3, 3), dtype=jnp.float32) * 0.1   # OIHW, like torch

    # Reference: XLA conv with torch Conv2d(k=3, stride=1, padding=1, bias=False)
    # semantics, followed by ReLU.
    ref = jax.lax.conv_general_dilated(
        x, w, window_strides=(1, 1), padding=((1, 1), (1, 1)),
        dimension_numbers=("NCHW", "OIHW", "NCHW"))
    ref = jnp.maximum(ref, 0.0)

    # Default config: 1 image/step, grid=(2,) -> both v7x TensorCores busy.
    out = jax.block_until_ready(conv3x3_relu(x, w))
    assert out.shape == (N, Cout, H, W)
    assert jnp.allclose(out, ref, atol=1e-4, rtol=1e-4), float(jnp.max(jnp.abs(out - ref)))

    # Lane-batched config: both images packed into one (Cout, 9*Cin) @ (9*Cin, 2*H*W) matmul.
    out_b = jax.block_until_ready(conv3x3_relu(x, w, images_per_step=2))
    assert out_b.shape == (N, Cout, H, W)
    assert jnp.allclose(out_b, ref, atol=1e-4, rtol=1e-4), float(jnp.max(jnp.abs(out_b - ref)))

    print("KERNEL_OK")
</pallas_src>

<mosaic_0001>
module attributes {stable_mosaic.version = 11 : i64} {
  func.func @kernel(%arg0: i32, %arg1: memref<1x4x256xf32, #tpu.memory_space<vmem>>, %arg2: memref<8x36xf32, #tpu.memory_space<vmem>>, %arg3: memref<1x8x256xf32, #tpu.memory_space<vmem>>) attributes {dimension_semantics = [#tpu.dimension_semantics<parallel>], iteration_bounds = array<i64: 2>, scalar_prefetch = 0 : i64, scratch_operands = 0 : i64, tpu.core_type = #tpu.core_type<tc>, window_params = [{transform_indices = @transform_0, window_bounds = array<i64: 1, 4, 256>}, {pipeline_mode = #tpu.pipeline_mode<synchronous>, transform_indices = @transform_1, window_bounds = array<i64: 8, 36>}, {transform_indices = @transform_2, window_bounds = array<i64: 1, 8, 256>}]} {
    %c0 = arith.constant 0 : index
    %c0_0 = arith.constant 0 : index
    %c0_1 = arith.constant 0 : index
    %0 = vector.load %arg1[%c0, %c0_0, %c0_1] : memref<1x4x256xf32, #tpu.memory_space<vmem>>, vector<1x4x256xf32>
    %1 = vector.shape_cast %0 : vector<1x4x256xf32> to vector<4x256xf32>
    %2 = tpu.iota {dimensions = array<i32: 1>} : vector<1x256xi32>
    %c255_i32 = arith.constant 255 : i32
    %3 = vector.broadcast %c255_i32 : i32 to vector<1x256xi32>
    %4 = arith.andi %2, %3 : vector<1x256xi32>
    %c15_i32 = arith.constant 15 : i32
    %5 = vector.broadcast %c15_i32 : i32 to vector<1x256xi32>
    %6 = arith.andi %4, %5 : vector<1x256xi32>
    %c16_i32 = arith.constant 16 : i32
    %7 = vector.broadcast %c16_i32 : i32 to vector<1x256xi32>
    %8 = arith.cmpi sge, %4, %7 : vector<1x256xi32>
    %c240_i32 = arith.constant 240 : i32
    %9 = vector.broadcast %c240_i32 : i32 to vector<1x256xi32>
    %10 = arith.cmpi slt, %4, %9 : vector<1x256xi32>
    %c1_i32 = arith.constant 1 : i32
    %11 = vector.broadcast %c1_i32 : i32 to vector<1x256xi32>
    %12 = arith.cmpi sge, %6, %11 : vector<1x256xi32>
    %c14_i32 = arith.constant 14 : i32
    %13 = vector.broadcast %c14_i32 : i32 to vector<1x256xi32>
    %14 = arith.cmpi sle, %6, %13 : vector<1x256xi32>
    %c17_i32 = arith.constant 17 : i32
    %15 = tpu.dynamic_rotate %1 by %c17_i32 dim 1 : vector<4x256xf32>, i32 -> vector<4x256xf32>
    %16 = arith.andi %8, %12 : vector<1x256xi1>
    %cst = arith.constant 0.000000e+00 : f32
    %17 = vector.shape_cast %16 : vector<1x256xi1> to vector<1x256xi1>
    %18 = vector.broadcast %17 : vector<1x256xi1> to vector<4x256xi1>
    %19 = vector.broadcast %cst : f32 to vector<4x256xf32>
    %20 = arith.select %18, %15, %19 : vector<4x256xi1>, vector<4x256xf32>
    %c16_i32_2 = arith.constant 16 : i32
    %21 = tpu.dynamic_rotate %1 by %c16_i32_2 dim 1 : vector<4x256xf32>, i32 -> vector<4x256xf32>
    %cst_3 = arith.constant 0.000000e+00 : f32
    %22 = vector.shape_cast %8 : vector<1x256xi1> to vector<1x256xi1>
    %23 = vector.broadcast %22 : vector<1x256xi1> to vector<4x256xi1>
    %24 = vector.broadcast %cst_3 : f32 to vector<4x256xf32>
    %25 = arith.select %23, %21, %24 : vector<4x256xi1>, vector<4x256xf32>
    %c15_i32_4 = arith.constant 15 : i32
    %26 = tpu.dynamic_rotate %1 by %c15_i32_4 dim 1 : vector<4x256xf32>, i32 -> vector<4x256xf32>
    %27 = arith.andi %8, %14 : vector<1x256xi1>
    %cst_5 = arith.constant 0.000000e+00 : f32
    %28 = vector.shape_cast %27 : vector<1x256xi1> to vector<1x256xi1>
    %29 = vector.broadcast %28 : vector<1x256xi1> to vector<4x256xi1>
    %30 = vector.broadcast %cst_5 : f32 to vector<4x256xf32>
    %31 = arith.select %29, %26, %30 : vector<4x256xi1>, vector<4x256xf32>
    %c1_i32_6 = arith.constant 1 : i32
    %32 = tpu.dynamic_rotate %1 by %c1_i32_6 dim 1 : vector<4x256xf32>, i32 -> vector<4x256xf32>
    %cst_7 = arith.constant 0.000000e+00 : f32
    %33 = vector.shape_cast %12 : vector<1x256xi1> to vector<1x256xi1>
    %34 = vector.broadcast %33 : vector<1x256xi1> to vector<4x256xi1>
    %35 = vector.broadcast %cst_7 : f32 to vector<4x256xf32>
    %36 = arith.select %34, %32, %35 : vector<4x256xi1>, vector<4x256xf32>
    %c255_i32_8 = arith.constant 255 : i32
    %37 = tpu.dynamic_rotate %1 by %c255_i32_8 dim 1 : vector<4x256xf32>, i32 -> vector<4x256xf32>
    %cst_9 = arith.constant 0.000000e+00 : f32
    %38 = vector.shape_cast %14 : vector<1x256xi1> to vector<1x256xi1>
    %39 = vector.broadcast %38 : vector<1x256xi1> to vector<4x256xi1>
    %40 = vector.broadcast %cst_9 : f32 to vector<4x256xf32>
    %41 = arith.select %39, %37, %40 : vector<4x256xi1>, vector<4x256xf32>
    %c241_i32 = arith.constant 241 : i32
    %42 = tpu.dynamic_rotate %1 by %c241_i32 dim 1 : vector<4x256xf32>, i32 -> vector<4x256xf32>
    %43 = arith.andi %10, %12 : vector<1x256xi1>
    %cst_10 = arith.constant 0.000000e+00 : f32
    %44 = vector.shape_cast %43 : vector<1x256xi1> to vector<1x256xi1>
    %45 = vector.broadcast %44 : vector<1x256xi1> to vector<4x256xi1>
    %46 = vector.broadcast %cst_10 : f32 to vector<4x256xf32>
    %47 = arith.select %45, %42, %46 : vector<4x256xi1>, vector<4x256xf32>
    %c240_i32_11 = arith.constant 240 : i32
    %48 = tpu.dynamic_rotate %1 by %c240_i32_11 dim 1 : vector<4x256xf32>, i32 -> vector<4x256xf32>
    %cst_12 = arith.constant 0.000000e+00 : f32
    %49 = vector.shape_cast %10 : vector<1x256xi1> to vector<1x256xi1>
    %50 = vector.broadcast %49 : vector<1x256xi1> to vector<4x256xi1>
    %51 = vector.broadcast %cst_12 : f32 to vector<4x256xf32>
    %52 = arith.select %50, %48, %51 : vector<4x256xi1>, vector<4x256xf32>
    %c239_i32 = arith.constant 239 : i32
    %53 = tpu.dynamic_rotate %1 by %c239_i32 dim 1 : vector<4x256xf32>, i32 -> vector<4x256xf32>
    %54 = arith.andi %10, %14 : vector<1x256xi1>
    %cst_13 = arith.constant 0.000000e+00 : f32
    %55 = vector.shape_cast %54 : vector<1x256xi1> to vector<1x256xi1>
    %56 = vector.broadcast %55 : vector<1x256xi1> to vector<4x256xi1>
    %57 = vector.broadcast %cst_13 : f32 to vector<4x256xf32>
    %58 = arith.select %56, %53, %57 : vector<4x256xi1>, vector<4x256xf32>
    %59 = tpu.concatenate %20, %25, %31, %36, %1, %41, %47, %52, %58 in 0 : vector<4x256xf32>, vector<4x256xf32>, vector<4x256xf32>, vector<4x256xf32>, vector<4x256xf32>, vector<4x256xf32>, vector<4x256xf32>, vector<4x256xf32>, vector<4x256xf32> -> vector<36x256xf32>
    %c0_14 = arith.constant 0 : index
    %c0_15 = arith.constant 0 : index
    %60 = vector.load %arg2[%c0_14, %c0_15] : memref<8x36xf32, #tpu.memory_space<vmem>>, vector<8x36xf32>
    %cst_16 = arith.constant dense<0.000000e+00> : vector<8x256xf32>
    %61 = tpu.matmul %60, %59, %cst_16 {dimension_numbers = #tpu.dot_dimension_numbers<[1], [0], [0], [1], [0, 0, 1, 1], [], []>} : vector<8x36xf32>, vector<36x256xf32>, vector<8x256xf32> -> vector<8x256xf32>
    %cst_17 = arith.constant 0.000000e+00 : f32
    %62 = vector.broadcast %cst_17 : f32 to vector<8x256xf32>
    %63 = arith.maximumf %61, %62 : vector<8x256xf32>
    %c0_18 = arith.constant 0 : index
    %c0_19 = arith.constant 0 : index
    %c0_20 = arith.constant 0 : index
    %64 = vector.load %arg3[%c0_18, %c0_19, %c0_20] : memref<1x8x256xf32, #tpu.memory_space<vmem>>, vector<1x8x256xf32>
    %65 = vector.shape_cast %64 : vector<1x8x256xf32> to vector<8x256xf32>
    %66 = vector.shape_cast %63 : vector<8x256xf32> to vector<1x8x256xf32>
    tpu.vector_store %arg3[%c0_18, %c0_19, %c0_20], %66 {strides = array<i32>} : memref<1x8x256xf32, #tpu.memory_space<vmem>>, vector<1x8x256xf32>,
    return
  }
  func.func @transform_0(%arg0: i32) -> (i32, i32, i32) {
    %c0_i32 = arith.constant 0 : i32
    %c0_i32_0 = arith.constant 0 : i32
    %c0_i32_1 = arith.constant 0 : i32
    return %arg0, %c0_i32, %c0_i32_0 : i32, i32, i32
  }
  func.func @transform_1(%arg0: i32) -> (i32, i32) {
    %c0_i32 = arith.constant 0 : i32
    %c0_i32_0 = arith.constant 0 : i32
    %c0_i32_1 = arith.constant 0 : i32
    return %c0_i32, %c0_i32_0 : i32, i32
  }
  func.func @transform_2(%arg0: i32) -> (i32, i32, i32) {
    %c0_i32 = arith.constant 0 : i32
    %c0_i32_0 = arith.constant 0 : i32
    %c0_i32_1 = arith.constant 0 : i32
    return %arg0, %c0_i32, %c0_i32_0 : i32, i32, i32
  }
}

</mosaic_0001>

<bundles_post_ra>
// kernel: tpu_custom_call.1
= control target key start
LH: loop header
LB: loop body
LE: loop exit
PB: predicated region body
PF: predicated region fallthrough
CT: control target
= control target key end

     0   :  { %7 = vsyncpa [#allocation3], 0  ;;  %s1150_s0 = inlined_call_operand.hbm [shape: f32[2,4,256], index: 0, kind: input, shape index: {}]   ;;  %s1151_s1 = inlined_call_operand.hbm [shape: f32[8,36], index: 1, kind: input, shape index: {}]   ;;  %s1152_s2 = inlined_call_operand.hbm [shape: f32[2,8,256], index: 2, kind: output, shape index: {}]  }
   0x1   :  { %9 = vsyncpa [#allocation3 + $0x1], 0 }
   0x2   :  { %10 = vsyncpa [#allocation6], 0 }
   0x3   :  { %11 = vsyncpa [#allocation4], 0 }
   0x4   :  { %13 = vsyncpa [#allocation4 + $0x1], 0  ;;  %s806_s9 = smov 0   ;;  %s808_s10 = smov 0  }
   0x5   :  { %s810_s11 = smov 0   ;;  %s812_s12 = smov 0  }
   0x6 LB: > { %s827_s13 = sadd.s32 4294967295, %s777_s12   ;;  %s518_s14 = sadd.s32 4294967294, %s777_s12   ;;  %s777_s12 = sphi %s812_s12, %s1188_s12   ;;  %s773_s11 = sphi %s810_s11, %s1187_s11   ;;  %s769_s10 = sphi %s808_s10, %s1186_s10   ;;  %s765_s9 = sphi %s806_s9, %s1185_s9  }
   0x7   : > { %p39_p0 = scmp.ne.s32.totalorder %s769_s10, %s765_s9  ;;  %p1153_p1 = scmp.eq.s32.totalorder %s827_s13, 0 }
   0x8   : > { %p90_p3 = scmp.eq.s32.totalorder %s518_s14, 1  ;;  %p519_p5 = scmp.ge.s32.totalorder %s777_s12, 1 }
   0x9   : > { %p836_p4 = por %p1153_p1, %p39_p0  ;;  %p97_p7 = scmp.lt.s32.totalorder %s777_s12, 3 }
   0xa   : > { %p841_p6 = por %p90_p3, %p39_p0  ;;  %s779_s18 = smov [#allocation5]  }
   0xb   : > { %s1156_s15 = scalar_select %p836_p4, 1, 0 }
   0xc   : > { %s1157_s16 = scalar_select %p841_p6, 1, 0 }
   0xd   : > { %p846_p8 = pnand %p519_p5, %p97_p7  ;;  %s110_s19 = sshll.u32 %s779_s18, 4  ;;  %s111_s19 = int_to_ptr.vmem [resolvable:$true] %s110_s19 }
   0xe   : > { %s854_s20 = sadd.s32 1, %s777_s12   ;;  %s26_s24 = sadd.s32 1, %s773_s11 }
   0xf   : > { %s1158_s17 = scalar_select %p846_p8, 1, 0 }
  0x10   : > { %p555_p10 = pneg %p846_p8  ;;  %s23_s22 = ssub.s32 %s777_s12, %s854_s20 }
  0x11   : > { %p864_p12 = scmp.eq.s32.totalorder %s23_s22, 0  ;;  %s649_s27 = scalar_lea.hbm %s1151_s1, 128 }
  0x12   : > { %p858_p11 = pnand %p555_p10, %p1153_p1  ;;  %p650_p0 = scmp.ne.s32.totalorder %s1151_s1, %s649_s27 }
  0x13   : > { %s1160_s23 = scalar_select %p864_p12, 1, 0 }
  0x14   : > { %p651_p3 = pneg %p858_p11  ;;  %p656_p10 = scmp.lt.u32.totalorder %s649_s27, %s1151_s1 }
  0x16   : > { %p652_p5 = pnand %p651_p3, %p650_p0 }
  0x18   : > { %p653_p7 = pneg %p652_p5 }
  0x1a   : > { %p658_p9 = pnand %p656_p10, %p653_p7 }
  0x1c   : > { %661 = shalt.err (!%p658_p9)
}
  0x1d   : > { %s662_s4 = scalar_lea.vmem %s111_s19, 128  ;;  %p670_p6 = scmp.lt.s32.totalorder %s111_s19, %s111_s19 }
  0x1e   : > { %p663_p1 = scmp.ne.s32.totalorder %s111_s19, %s662_s4  ;;  %p671_p4 = scmp.lt.s32.totalorder %s662_s4, %s662_s4 }
  0x20   : > { %p665_p2 = pnand %p663_p1, %p651_p3  ;;  %p672_p8 = por %p671_p4, %p670_p6 }
  0x22   : > { %p666_p13 = pneg %p665_p2 }
  0x24   : > { %p673_p12 = pnand %p672_p8, %p666_p13 }
  0x26   : > { %676 = shalt.err (!%p673_p12)
}
  0x27   : > { %558 = dma.hbm_to_vmem [thread:$0]  (!%p858_p11), %s1151_s1, 128, %s111_s19, [#allocation6]  }
  0x28   : > { %p1161_p1 = scmp.ne.s32.totalorder %s1160_s23, 0  ;;  %p34_p2 = scmp.eq.s32.totalorder %s777_s12, 0 }
  0x29   : > { %p1162_p4 = scmp.ne.s32.totalorder %s773_s11, %s769_s10  ;;  %p1163_p6 = scmp.eq.s32.totalorder %s827_s13, 1 }
  0x2a   : > { %s890_s7 = scalar_select %p1161_p1, %s773_s11, %s26_s24  }
  0x2b   : > { %p898_p8 = por %p1163_p6, %p1162_p4  ;;  %p568_p9 = scmp.lt.s32.totalorder %s777_s12, 2 }
  0x2c   : > { %s121_s14 = sand.u32 1, %s773_s11   ;;  %p1165_p12 = pmov %p1162_p4 }
  0x2d   : > { %s522_s18 = sshll.u32 %s121_s14, 3  ;;  %s537_s21 = sshll.u32 %s777_s12, 7 }
  0x2e   : > { %p35_p13 = por %p34_p2, %p1165_p12  ;;  %s911_s19 = scalar_lea.hbm %s1150_s0, %s537_s21 }
  0x2f   : > { %s125_s23 = scalar_lea.vmem [#allocation2], %s522_s18  ;;  %s122_s27 = scalar_lea.sflag [#allocation3], %s121_s14 }
  0x30   : > { %s133_s24 = sshll.u32 %s125_s23, 4  ;;  %p913_p11 = pnand %p568_p9, %p35_p13  ;;  %s917_s24 = int_to_ptr.vmem [resolvable:$true] %s133_s24 }
  0x31   : > { %s677_s28 = scalar_lea.hbm %s911_s19, 128  ;;  %s682_s3 = scalar_lea.hbm %s1150_s0, 256 }
  0x32   : > { %p678_p0 = scmp.ne.s32.totalorder %s911_s19, %s677_s28  ;;  %p679_p3 = pneg %p913_p11 }
  0x33   : > { %p683_p10 = scmp.lt.u32.totalorder %s911_s19, %s1150_s0  ;;  %p684_p1 = scmp.lt.u32.totalorder %s682_s3, %s677_s28 }
  0x34   : > { %p680_p5 = pnand %p679_p3, %p678_p0  ;;  %p686_p4 = scmp.lt.u32.totalorder %s677_s28, %s911_s19 }
  0x35   : > { %p685_p2 = por %p684_p1, %p683_p10 }
  0x36   : > { %p681_p7 = pneg %p680_p5 }
  0x37   : > { %p687_p6 = por %p686_p4, %p685_p2 }
  0x39   : > { %p688_p9 = pnand %p687_p6, %p681_p7 }
  0x3b   : > { %691 = shalt.err (!%p688_p9)
}
  0x3c   : > { %s692_s6 = scalar_lea.vmem %s917_s24, 128  ;;  %s780_s14 = smov [#allocation2]  }
  0x3d   : > { %p693_p12 = scmp.ne.s32.totalorder %s917_s24, %s692_s6  ;;  %s697_s18 = sshll.u32 %s780_s14, 4  ;;  %s698_s18 = int_to_ptr.vmem [resolvable:$false] %s697_s18 }
  0x3e   : > { %s699_s21 = scalar_lea.vmem %s698_s18, 256  ;;  %p700_p5 = scmp.lt.s32.totalorder %s917_s24, %s698_s18 }
  0x3f   : > { %p695_p13 = pnand %p693_p12, %p679_p3  ;;  %p701_p10 = scmp.lt.s32.totalorder %s699_s21, %s692_s6 }
  0x41   : > { %p696_p0 = pneg %p695_p13  ;;  %p702_p1 = por %p701_p10, %p700_p5 }
  0x43   : > { %p703_p2 = pnand %p702_p1, %p696_p0 }
  0x45   : > { %706 = shalt.err (!%p703_p2)
}
  0x46   : > { %562 = dma.hbm_to_vmem [thread:$0]  (!%p913_p11), %s911_s19, 128, %s917_s24, %s122_s27  }
  0x47   : > { %p1167_p7 = scmp.ne.s32.totalorder %s1158_s17, 0 }
  0x48   : > { %s947_s22 = sand.u32 (!%p1167_p7), 1, %s769_s10   ;;  %p1168_p3 = scmp.ne.s32.totalorder (!%p1167_p7), %s1156_s15, 0 }
  0x49   : > { %142 = sbr.rel (%p1167_p7) target bundleno = 458 (0x1ca), region = 28  ;;  %s526_s25 = sshll.u32 (!%p1167_p7), %s947_s22, 3 }
  0x4a   : > { %s145_s23 = scalar_lea.sflag (!%p1167_p7), [#allocation3], %s947_s22  ;;  %s148_s28 = scalar_lea.vmem (!%p1167_p7), [#allocation2], %s526_s25 }
  0x50   : > { %752 = dma.done.wait (%p1168_p3), %s145_s23, 128  }
  0x51   : > { %754 = vsyncadd (%p1168_p3), %s145_s23, 4294967168  ;;  %p1169_p4 = scmp.eq.s32.totalorder %s827_s13, 0 }
  0x53   : > { %756 = dma.done.wait (%p1169_p4), [#allocation6], 128   ;;  %p1170_p11 = pmov %p1169_p4 }
  0x54   : > { %v959_v0 = vld [vmem:[%s148_s28] sm:$0xff]  ;;  %s781_s17 = smov 17   ;;  %s782_s19 = smov 1   ;;  %v789_v3 = vmov 0.0   ;;  %v174_v4 = vlaneseq  ;;  %vm328_vm11 = vcmask 1043456  }
  0x55   : > { %758 = vsyncadd (%p1170_p11), [#allocation6], 4294967168  ;;  %v963_v1 = vcombine.high %v959_v0, %v959_v0  ;;  %s783_s15 = smov 15   ;;  %s784_s24 = smov 16   ;;  %412 = vmatprep.mubr.f32.mxu0 %v789_v3 }
  0x56   : > { %s785_s26 = smov 127   ;;  %s786_s27 = smov 112   ;;  %v969_v5 = vand.u32 127, %v174_v4 }
  0x57   : > { %v623_v2 = vpack.i.bf16 %v963_v1, %v959_v0  ;;  %s787_s29 = smov 113   ;;  %s788_s30 = smov 111  }
  0x58   : > { %v176_v6 = vadd.s32 128, %v969_v5  ;;  %v177_v7 = vand.u32 255, %v969_v5  ;;  %vm239_vm0 = vcmp.lt.s32.totalorder %v969_v5, 1  ;;  %vm211_vm1 = vcmp.lt.s32.totalorder %v969_v5, 16  ;;  %s528_s3 = sshll.u32 %s947_s22, 4  ;;  %s538_s4 = sshll.u32 %s827_s13, 8 }
  0x59   : > { %624 = vrot.lane.b32.xlu1 %v623_v2, %s781_s17  ;;  %614 = vrot.lane.b32.xlu0 %v623_v2, %s782_s19  ;;  %vm196_vm2 = vcmp.lt.s32.totalorder %v969_v5, 17  ;;  %vm252_vm3 = vcmp.lt.s32.totalorder %v969_v5, 127  ;;  %vm224_vm5 = vcmp.lt.s32.totalorder %v969_v5, 15  ;;  %vm280_vm10 = vcmp.lt.s32.totalorder %v969_v5, 112  ;;  %s172_s5 = scalar_lea.vmem [#allocation7], %s528_s3  ;;  %s1106_s21 = scalar_lea.hbm %s1152_s2, %s538_s4 }
  0x5a   : > { %v178_v8 = vand.u32 255, %v176_v6  ;;  %v973_v9 = vand.u32 15, %v177_v7  ;;  %vm983_vm6 = vcmp.ge.s32.totalorder %v177_v7, 16  ;;  %vm265_vm13 = vcmp.lt.s32.totalorder %v969_v5, 113  ;;  %s438_s6 = sshll.u32 %s172_s5, 4  ;;  %s424_s25 = scalar_lea.sflag [#allocation4], %s947_s22  ;;  %s1108_s6 = int_to_ptr.vmem [resolvable:$true] %s438_s6 }
  0x5b   : > { %vm293_vm15 = vcmp.lt.s32.totalorder %v969_v5, 111  ;;  %s707_s13 = scalar_lea.vmem %s1108_s6, 256  ;;  %s790_s23 = smov [#allocation7]  }
  0x5c   : > { %v975_v10 = vand.u32 15, %v178_v8  ;;  %vm185_vm7 = vcmp.ge.s32.totalorder %v973_v9, 1  ;;  %vm187_vm8 = vcmp.le.s32.totalorder %v973_v9, 14  ;;  %vm989_vm9 = vcmp.lt.s32.totalorder %v178_v8, 240  ;;  %p708_p6 = scmp.ne.s32.totalorder %s1108_s6, %s707_s13  ;;  %s711_s28 = sshll.u32 %s790_s23, 4  ;;  %s712_s28 = int_to_ptr.vmem [resolvable:$false] %s711_s28 }
  0x5d   : > { %629 = vrot.lane.b32.xlu1 %v623_v2, %s783_s15  ;;  %619 = vrot.lane.b32.xlu0 %v623_v2, %s784_s24  ;;  %vm1006_vm12 = vmand %vm983_vm6, %vm185_vm7  ;;  %s713_s17 = scalar_lea.vmem %s712_s28, 512  ;;  %p714_p13 = scmp.lt.s32.totalorder %s1108_s6, %s712_s28 }
  0x5e   : > { %vm186_vm4 = vcmp.ge.s32.totalorder %v975_v10, 1  ;;  %vm188_vm14 = vcmp.le.s32.totalorder %v975_v10, 14  ;;  %p709_p9 = pnand %p708_p6, %p898_p8  ;;  %p715_p0 = scmp.lt.s32.totalorder %s713_s17, %s707_s13 }
  0x60   : > { %p710_p12 = pneg %p709_p9  ;;  %p716_p5 = por %p715_p0, %p714_p13 }
  0x61   : > { %634 = vrot.lane.b32.xlu0 %v623_v2, %s785_s26  ;;  %639 = vrot.lane.b32.xlu1 %v623_v2, %s786_s27 }
  0x62   : > { %p717_p10 = pnand %p716_p5, %p710_p12 }
  0x65   : > { %644 = vrot.lane.b32.xlu0 %v623_v2, %s787_s29  ;;  %289 = vrot.lane.b32.xlu1 %v959_v0, %s788_s30 }
  0x69   : > { %291 = vrot.lane.b32.xlu0 %v963_v1, %s788_s30 }
  0xcb   : > { %v625_v11 = vpop.permute.xlu1 %624  ;;  %v615_v12 = vpop.permute.xlu0 %614 }
  0xcc   : > { %v627_v14 = vunpack.i.h.bf16 %v625_v11  ;;  %v626_v15 = vunpack.i.l.bf16 %v625_v11  ;;  %v617_v16 = vunpack.i.h.bf16 %v615_v12  ;;  %v616_v17 = vunpack.i.l.bf16 %v615_v12 }
  0xce   : > { %v240_v19 = vsel %vm239_vm0, %v616_v17, %v617_v16  ;;  %v241_v20 = vsel %vm239_vm0, %v617_v16, %v616_v17  ;;  %v197_v21 = vsel %vm196_vm2, %v626_v15, %v627_v14  ;;  %v198_v22 = vsel %vm196_vm2, %v627_v14, %v626_v15  ;;  %vm1033_vm0 = vmand %vm983_vm6, %vm187_vm8 }
  0xcf   : > { %v630_v24 = vpop.permute.xlu1 %629  ;;  %v620_v25 = vpop.permute.xlu0 %619  ;;  %v247_v26 = vsel %vm186_vm4, %v240_v19, 0.0  ;;  %v246_v27 = vsel %vm185_vm7, %v241_v20, 0.0  ;;  %v206_v32 = vsel %vm186_vm4, %v197_v21, 0.0  ;;  %v205_v34 = vsel %vm1006_vm12, %v198_v22, 0.0  ;;  %vm1079_vm2 = vmand %vm989_vm9, %vm188_vm14 }
  0xd0   : > { %v632_v28 = vunpack.i.h.bf16 %v630_v24  ;;  %v631_v29 = vunpack.i.l.bf16 %v630_v24  ;;  %v622_v30 = vunpack.i.h.bf16 %v620_v25  ;;  %v621_v31 = vunpack.i.l.bf16 %v620_v25 }
  0xd1   : > { %v313_v33 = vrot.slane %v247_v26, 4  ;;  %v312_v45 = vrot.slane %v246_v27, 4 }
  0xd2   : > { %v213_v35 = vsel %vm211_vm1, %v622_v30, %v621_v31  ;;  %v212_v36 = vsel %vm211_vm1, %v621_v31, %v622_v30  ;;  %v225_v37 = vsel %vm224_vm5, %v631_v29, %v632_v28  ;;  %v226_v38 = vsel %vm224_vm5, %v632_v28, %v631_v29  ;;  %vm1063_vm1 = vmand %vm989_vm9, %vm186_vm4  ;;  %v337_v28 = vld [vmem:[#allocation5] sm:$0xff] }
  0xd3   : > { %v635_v40 = vpop.permute.xlu0 %634  ;;  %v640_v41 = vpop.permute.xlu1 %639  ;;  %v234_v42 = vsel %vm188_vm14, %v225_v37, 0.0  ;;  %v307_v43 = vrot.slane %v212_v36, 4  ;;  %v218_v44 = vsel %vm983_vm6, %v213_v35, 0.0  ;;  %v233_v52 = vsel %vm1033_vm0, %v226_v38, 0.0 }
  0xd4   : > { %v637_v46 = vunpack.i.h.bf16 %v635_v40  ;;  %v636_v47 = vunpack.i.l.bf16 %v635_v40  ;;  %v642_v48 = vunpack.i.h.bf16 %v640_v41  ;;  %v641_v49 = vunpack.i.l.bf16 %v640_v41 }
  0xd5   : > { %v330_v50 = vsel %vm328_vm11, %v206_v32, %v307_v43  ;;  %v332_v51 = vsel %vm328_vm11, %v234_v42, %v313_v33  ;;  %v306_v53 = vrot.slane %v218_v44, 4  ;;  %v331_v12 = vsel %vm328_vm11, %v233_v52, %v312_v45 }
  0xd6   : > { %v253_v54 = vsel %vm252_vm3, %v636_v47, %v637_v46  ;;  %v254_v55 = vsel %vm252_vm3, %v637_v46, %v636_v47  ;;  %v281_v56 = vsel %vm280_vm10, %v641_v49, %v642_v48  ;;  %v282_v57 = vsel %vm280_vm10, %v642_v48, %v641_v49 }
  0xd7   : > { %v259_v58 = vsel %vm187_vm8, %v253_v54, 0.0  ;;  %v288_v59 = vsel %vm989_vm9, %v282_v57, 0.0  ;;  %v324_v60 = vrot.slane %v281_v56, 4  ;;  %v645_v61 = vpop.permute.xlu0 %644  ;;  %v260_v62 = vsel %vm188_vm14, %v254_v55, 0.0  ;;  %v290_v13 = vpop.permute.xlu1 %289 }
  0xd8   : > { %v318_v63 = vrot.slane %v259_v58, 4  ;;  %v325_v2 = vrot.slane %v288_v59, 4  ;;  %v647_v3 = vunpack.i.h.bf16 %v645_v61  ;;  %v646_v4 = vunpack.i.l.bf16 %v645_v61 }
  0xd9   : > { %v319_v7 = vrot.slane %v260_v62, 4  ;;  %v539_v8 = vpack.c.bf16 %v332_v51, %v330_v50  ;;  %v329_v11 = vsel %vm328_vm11, %v205_v34, %v306_v53  ;;  %vm338_vm3 = vcmask 293888  }
  0xda   : > { %v266_v14 = vsel %vm265_vm13, %v646_v4, %v647_v3  ;;  %v267_v15 = vsel %vm265_vm13, %v647_v3, %v646_v4  ;;  %v541_v16 = vpack.c.bf16 %v331_v12, %v329_v11  ;;  %v333_v22 = vsel %vm328_vm11, %v959_v0, %v318_v63 }
  0xdb   : > { %540 = vmatprep.subr.bf16.mxu0 %v539_v8  ;;  %v275_v17 = vsel %vm1063_vm1, %v267_v15, 0.0  ;;  %v292_v20 = vpop.permute.xlu0 %291  ;;  %v274_v21 = vsel %vm185_vm7, %v266_v14, 0.0  ;;  %v334_v23 = vsel %vm328_vm11, %v963_v1, %v319_v7 }
  0xdc   : > { %542 = vmatpush1.bf16.msra.mxu0 %v541_v16  ;;  %v336_v10 = vsel %vm328_vm11, %v275_v17, %v325_v2  ;;  %v295_v18 = vsel %vm293_vm15, %v292_v20, %v290_v13  ;;  %v335_v24 = vsel %vm328_vm11, %v274_v21, %v324_v60  ;;  %v294_v27 = vsel %vm293_vm15, %v290_v13, %v292_v20 }
  0xdd   : > { %v543_v25 = vpack.c.bf16 %v336_v10, %v334_v23  ;;  %v545_v26 = vpack.c.bf16 %v335_v24, %v333_v22  ;;  %v303_v0 = vsel %vm1079_vm2, %v295_v18, 0.0  ;;  %v302_v1 = vsel %vm187_vm8, %v294_v27, 0.0 }
  0xdf   : > { %544 = vmatprep.subr.bf16.mxu0 %v543_v25 }
  0xe0   : > { %546 = vmatpush1.bf16.msra.mxu0 %v545_v26 }
  0xe1   : > { %529 = vmatprep.subr.msk.mxu0 %vm328_vm11, %v303_v0 }
  0xe4   : > { %530 = vmatpush1.msk.msra.mxu0 %vm328_vm11, %v302_v1 }
  0xe5   : > { %531 = vmatmul.mubr.msk.f32.vlgmr.msra.gmra.mrb[0].mxu0 %vm338_vm3, %v337_v28 }
 0x1b8   : > { %v414_v5 = vpop.f32.mrb[0].mxu0 }
 0x1b9   : > { %v419_v29 = vmax.f32 %v414_v5, 0.0  ;;  %v416_v30 = vpop.f32.mrb[1].mxu0 }
 0x1ba   : > { %v420_v31 = vmax.f32 %v416_v30, 0.0 }
 0x1bb   : > { %421 = vst [vmem:[%s172_s5] sm:$0xff] %v419_v29 }
 0x1bc   : > { %422 = vst [vmem:[%s172_s5 + $0x8] sm:$0xff] %v420_v31 }
 0x1bd   : > { %720 = shalt.err (!%p717_p10)
}
 0x1be   : > { %s721_s22 = scalar_lea.hbm %s1106_s21, 256  ;;  %s725_s24 = scalar_lea.hbm %s1152_s2, 512 }
 0x1bf   : > { %p722_p1 = scmp.ne.s32.totalorder %s1106_s21, %s721_s22  ;;  %p726_p3 = scmp.lt.u32.totalorder %s1106_s21, %s1152_s2 }
 0x1c0   : > { %p727_p4 = scmp.lt.u32.totalorder %s725_s24, %s721_s22  ;;  %p729_p6 = scmp.lt.u32.totalorder %s721_s22, %s1106_s21 }
 0x1c1   : > { %p723_p2 = pnand %p722_p1, %p898_p8 }
 0x1c2   : > { %p728_p11 = por %p727_p4, %p726_p3 }
 0x1c3   : > { %p724_p7 = pneg %p723_p2 }
 0x1c4   : > { %p730_p9 = por %p729_p6, %p728_p11 }
 0x1c6   : > { %p731_p12 = pnand %p730_p9, %p724_p7 }
 0x1c8   : > { %734 = shalt.err (!%p731_p12)
}
 0x1c9   : > { %553 = dma.vmem_to_hbm [thread:$0]  (%p898_p8), %s1108_s6, 256, %s1106_s21, %s424_s25  }
 0x1ca PF: > { %s450_s29 = sand.u32 1, %s765_s9   ;;  %p1183_p13 = scmp.ne.s32.totalorder %s1157_s16, 0 }
 0x1cb   : > { %p1184_p0 = scmp.ge.s32.totalorder %s777_s12, 2  ;;  %s451_s30 = scalar_lea.sflag [#allocation4], %s450_s29 }
 0x1cd   : > { %p564_p5 = pnand %p1184_p0, %p1183_p13 }
 0x1cf   : > { %760 = dma.done.wait (!%p564_p5), %s451_s30, 256  }
 0x1d0   : > { %762 = vsyncadd (!%p564_p5), %s451_s30, 4294967040  ;;  %p16_p10 = scmp.ge.s32.totalorder %s854_s20, 4   ;;  %s1185_s9 = smov %s769_s10 }
 0x1d1   : > { %s1186_s10 = smov %s773_s11  ;;  %s1187_s11 = smov %s890_s7 }
 0x1d2   : > { %s1188_s12 = smov %s854_s20  ;;  %18 = sbr.rel (!%p16_p10) target bundleno = 6 (0x6), region = 77 }
 0x1d9   :  { %456 = vsyncpa [#allocation3], 1 }
 0x1da   :  { %458 = vsyncpa [#allocation3 + $0x1], 1 }
 0x1db   :  { %459 = vsyncpa [#allocation6], 1 }
 0x1dc   :  { %460 = vsyncpa [#allocation4], 1 }
 0x1dd   :  { %462 = vsyncpa [#allocation4 + $0x1], 1 }

</bundles_post_ra>
